<compile_context>
chip_gen: v7x
topology: tpu7x:2x2x1
jax: 0.10.0
libtpu: 0.0.40
codegen_flags: <defaults>
</compile_context>

<pallas_src>
import numpy as np
import jax
import jax.numpy as jnp
from jax.experimental import pallas as pl
from jax.experimental.pallas import tpu as pltpu

# ----------------------------- model constants ------------------------------
V_COUNT = 512          # number of vertices (synthetic; real FLAME has 5023)
F_COUNT = 1024         # number of faces    (real FLAME has 9976)
NUM_JOINTS = 5         # global, neck, jaw, eye_left, eye_right
ID_DIM_FULL = 300
EXP_DIM_FULL = 100
POSE_BASIS = (NUM_JOINTS - 1) * 9   # 36
PARENTS = [-1, 0, 1, 1, 1]
NECK_KIN_CHAIN = [1, 0]             # derived as in FLAME.__init__
DTYPE = jnp.float32


def _round_up(x, m):
    return -(-x // m) * m


def _pick_v_tile(v_count):
    """Lane-dense vertex tile: as large as possible (amortizes ~0.35us/grid step,
    ~86% of HBM roofline at >=1024 lanes) while keeping >=2 grid steps so the
    grid pipeline / v7x megacore split stay active.  Real FLAME: V=5023 ->
    Vp=5120 -> tile 1024 -> 5 steps.  Demo: V=512 -> tile 256 -> 2 steps."""
    vp = _round_up(v_count, 256)
    for tile in (1024, 512, 256):
        if vp % tile == 0 and vp // tile >= 2:
            return tile
    return vp


# ------------------------------ Pallas kernel --------------------------------
def _flame_vertex_kernel(params_ref, coeff_ref, vtmpl_ref, wT_ref, aT_ref, o_ref):
    # params: (N, Kp)     bf16  [betas | pose_feature | zero pad]
    # coeff : (3, Kp, T)  bf16  planar [shapedirs ; posedirs], V on the lane axis
    # vtmpl : (3, T)      f32   planar v_template
    # wT    : (J, T)      f32   lbs_weights^T
    # aT    : (12N, J)    f32   rows 0..2 of each relative 4x4, entry-major:
    #                           row index = (4*i + c) * N + n
    # o     : (3, N, T)   f32   skinned vertices, coordinate-planar
    n_batch = o_ref.shape[1]
    n_joints = wT_ref.shape[0]
    params = params_ref[...]
    vt = vtmpl_ref[...]

    # fused shape+pose blendshapes: one MXU pass per coordinate plane (f32 acc)
    posed = [
        vt[c:c + 1, :]
        + jnp.dot(params, coeff_ref[c], preferred_element_type=jnp.float32)
        for c in range(3)
    ]                                                      # 3 x (N, T) f32

    # per-vertex skinning transform planes, batch-vectorized:
    #   tmat[(4i+c)*N + n, v] = sum_j A[n, j, i, c] * W[v, j]
    # J = 5 -> unrolled VPU rank-1 accumulation (a 5-deep MXU dot would be idle)
    wT = wT_ref[...]
    aT = aT_ref[...]
    tmat = aT[:, 0:1] * wT[0:1, :]
    for j in range(1, n_joints):
        tmat = tmat + aT[:, j:j + 1] * wT[j:j + 1, :]      # (12N, T)

    # homogeneous transform: one lane-dense (N, T) plane store per coordinate
    for i in range(3):
        row = (tmat[(4 * i + 0) * n_batch:(4 * i + 1) * n_batch, :] * posed[0]
               + tmat[(4 * i + 1) * n_batch:(4 * i + 2) * n_batch, :] * posed[1]
               + tmat[(4 * i + 2) * n_batch:(4 * i + 3) * n_batch, :] * posed[2]
               + tmat[(4 * i + 3) * n_batch:(4 * i + 4) * n_batch, :])
        o_ref[i, :, :] = row


def flame_vertices_call(params_cat, coeff_planar, v_template_planar, wT, aT_flat,
                        *, v_tile):
    N, Kp = params_cat.shape
    _, _, Vp = coeff_planar.shape
    Jn = wT.shape[0]
    assert Vp % v_tile == 0
    grid = (Vp // v_tile,)

    flops = (2 * N * Kp * 3 * Vp          # fused blendshape matmuls
             + 2 * (12 * N) * Jn * Vp     # skinning transform build
             + 7 * N * 3 * Vp)            # per-plane homogeneous FMA
    bytes_accessed = (coeff_planar.size * coeff_planar.dtype.itemsize
                      + v_template_planar.size * 4
                      + wT.size * 4
                      + aT_flat.size * 4
                      + params_cat.size * params_cat.dtype.itemsize
                      + 3 * N * Vp * 4)
    cost = pl.CostEstimate(flops=flops, transcendentals=0,
                           bytes_accessed=bytes_accessed)

    return pl.pallas_call(
        _flame_vertex_kernel,
        out_shape=jax.ShapeDtypeStruct((3, N, Vp), DTYPE),
        grid=grid,
        in_specs=[
            pl.BlockSpec((N, Kp), lambda i: (0, 0)),
            pl.BlockSpec((3, Kp, v_tile), lambda i: (0, 0, i)),
            pl.BlockSpec((3, v_tile), lambda i: (0, i)),
            pl.BlockSpec((Jn, v_tile), lambda i: (0, i)),
            pl.BlockSpec((12 * N, Jn), lambda i: (0, 0)),
        ],
        out_specs=pl.BlockSpec((3, N, v_tile), lambda i: (0, 0, i)),
        compiler_params=pltpu.CompilerParams(
            dimension_semantics=("parallel",)),
        cost_estimate=cost,
    )(params_cat, coeff_planar, v_template_planar, wT, aT_flat)


# ------------------------------- JAX glue ops ---------------------------------
def batch_rodrigues(rot_vecs):
    angle = jnp.linalg.norm(rot_vecs + 1e-8, axis=1, keepdims=True)   # (B, 1)
    rot_dir = rot_vecs / angle
    cos = jnp.cos(angle)[:, None, :]                                  # (B, 1, 1)
    sin = jnp.sin(angle)[:, None, :]
    rx, ry, rz = rot_dir[:, 0:1], rot_dir[:, 1:2], rot_dir[:, 2:3]
    zeros = jnp.zeros_like(rx)
    K = jnp.concatenate([zeros, -rz, ry, rz, zeros, -rx, -ry, rx, zeros],
                        axis=1).reshape(-1, 3, 3)
    ident = jnp.eye(3, dtype=rot_vecs.dtype)[None]
    return ident + sin * K + (1.0 - cos) * jnp.matmul(K, K)


def transform_mat(R, t):
    R4 = jnp.concatenate([R, jnp.zeros_like(R[..., :1, :])], axis=-2)   # (...,4,3)
    t4 = jnp.concatenate([t, jnp.ones_like(t[..., :1, :])], axis=-2)    # (...,4,1)
    return jnp.concatenate([R4, t4], axis=-1)                           # (...,4,4)


def batch_rigid_transform(rot_mats, joints, parents):
    # rot_mats (N, J, 3, 3), joints (N, J, 3)
    joints_e = joints[..., None]                                        # (N,J,3,1)
    parent_idx = jnp.array(parents[1:], dtype=jnp.int32)
    rel_joints = jnp.concatenate(
        [joints_e[:, :1], joints_e[:, 1:] - joints_e[:, parent_idx]], axis=1)
    transforms_mat = transform_mat(rot_mats, rel_joints)                # (N,J,4,4)
    chain = [transforms_mat[:, 0]]
    for i in range(1, len(parents)):
        chain.append(jnp.matmul(chain[parents[i]], transforms_mat[:, i]))
    transforms = jnp.stack(chain, axis=1)                               # (N,J,4,4)
    posed_joints = transforms[:, :, :3, 3]
    joints_homogen = jnp.concatenate(
        [joints_e, jnp.zeros_like(joints_e[:, :, :1])], axis=2)         # (N,J,4,1)
    last_col = jnp.matmul(transforms, joints_homogen)                   # (N,J,4,1)
    rel_transforms = transforms - jnp.concatenate(
        [jnp.zeros_like(transforms[..., :3]), last_col], axis=-1)
    return posed_joints, rel_transforms


def rot_mat_to_euler(rot_mats):
    sy = jnp.sqrt(rot_mats[:, 0, 0] ** 2 + rot_mats[:, 1, 0] ** 2)
    return jnp.arctan2(-rot_mats[:, 2, 0], sy)


def find_dynamic_lm(rotation_matrix, dyn_faces_idx, dyn_bary):
    N = rotation_matrix.shape[0]
    rot_mats = rotation_matrix[:, jnp.array(NECK_KIN_CHAIN)]            # (N,2,3,3)
    rel = jnp.broadcast_to(jnp.eye(3, dtype=rotation_matrix.dtype), (N, 3, 3))
    for idx in range(len(NECK_KIN_CHAIN)):
        rel = jnp.matmul(rot_mats[:, idx], rel)
    y_rot_angle = jnp.round(
        jnp.minimum(rot_mat_to_euler(rel) * 180.0 / np.pi, 39.0)).astype(jnp.int32)
    neg_mask = (y_rot_angle < 0).astype(jnp.int32)
    mask = (y_rot_angle < -39).astype(jnp.int32)
    neg_vals = mask * 78 + (1 - mask) * (39 - y_rot_angle)
    y_rot_angle = neg_mask * neg_vals + (1 - neg_mask) * y_rot_angle
    return dyn_faces_idx[y_rot_angle], dyn_bary[y_rot_angle]


def vertices2landmarks(vertices, faces, lmk_faces_idx, lmk_bary_coords):
    N = vertices.shape[0]
    lmk_faces = faces[lmk_faces_idx]                                    # (N,L,3)
    batch_idx = jnp.arange(N)[:, None, None]
    lmk_vertices = vertices[batch_idx, lmk_faces]                       # (N,L,3,3)
    return jnp.einsum('nlfi,nlf->nli', lmk_vertices, lmk_bary_coords)


# ---------------------- offline parameter preparation -------------------------
def prepare_flame_params(params, id_dim, exp_dim, v_tile):
    """One-time reshuffle of the FLAME buffers into kernel-friendly layouts."""
    V = params['v_template'].shape[0]
    P = params['rotation_coeff'].shape[0]
    shape_coeff = jnp.concatenate(
        [params['identity_coeff'][..., :id_dim],
         params['expression_coeff'][..., :exp_dim]], axis=-1)            # (V,3,L)

    # planar (coordinate-major) layouts with V on the 128-lane axis
    shape_planar = jnp.transpose(shape_coeff, (1, 2, 0))                 # (3,L,V)
    rot_planar = jnp.transpose(
        params['rotation_coeff'].reshape(P, V, 3), (2, 0, 1))            # (3,P,V)
    coeff_planar = jnp.concatenate([shape_planar, rot_planar], axis=1)   # (3,K,V)
    v_template_planar = params['v_template'].T                           # (3,V)
    wT = params['lbs_weights'].T                                         # (J,V)

    # pad contraction dim K to a multiple of 16 (bf16 sublane packing on MXU)
    K = coeff_planar.shape[1]
    K_pad = _round_up(K, 16)
    if K_pad > K:
        coeff_planar = jnp.pad(coeff_planar, ((0, 0), (0, K_pad - K), (0, 0)))

    # pad the vertex lane axis to a multiple of the tile (real FLAME: V=5023)
    pad = (-V) % v_tile
    if pad:
        coeff_planar = jnp.pad(coeff_planar, ((0, 0), (0, 0), (0, pad)))
        v_template_planar = jnp.pad(v_template_planar, ((0, 0), (0, pad)))
        wT = jnp.pad(wT, ((0, 0), (0, pad)))

    # tiny joint-regressor products so joints come straight from betas
    Jr_template = params['joint_regressor'] @ params['v_template']       # (J,3)
    Jr_shapedirs = jnp.einsum('jv,vkl->jkl',
                              params['joint_regressor'], shape_coeff)    # (J,3,L)

    return {
        'coeff_planar': coeff_planar.astype(jnp.bfloat16),   # dominant HBM stream
        'v_template_planar': v_template_planar.astype(DTYPE),
        'wT': wT.astype(DTYPE),
        'Jr_template': Jr_template.astype(DTYPE),
        'Jr_shapedirs': Jr_shapedirs.astype(DTYPE),
        'f': params['f'],
        'dynamic_lm_faces_idx': params['dynamic_lm_faces_idx'],
        'dynamic_lm_bary_coords': params['dynamic_lm_bary_coords'],
        'static_lm_faces_idx': params['static_lm_faces_idx'],
        'static_lm_bary_coords': params['static_lm_bary_coords'],
    }


# ------------------------------- FLAME forward --------------------------------
def flame_forward(prepared, identity_params, expression_params, global_rotation,
                  neck_rotation, jaw_rotation, eyes_rotation, *, v_tile,
                  num_vertices):
    N = identity_params.shape[0]
    betas = jnp.concatenate([identity_params, expression_params], axis=-1)  # (N,L)

    # rotation matrices — faithful to the reference calculate_rotation_matrix:
    # torch.cat(..., dim=0) over joints, rodrigues, then .view(N, -1, 3, 3)
    left_eye, right_eye = jnp.split(eyes_rotation, 2, axis=-1)
    rots = jnp.concatenate(
        [global_rotation, neck_rotation, jaw_rotation, left_eye, right_eye], axis=0)
    rotation_matrix = batch_rodrigues(rots).reshape(N, -1, 3, 3)            # (N,5,3,3)

    # pose feature: (R_j - I) for non-root joints, flattened -> (N, 36)
    ident3 = jnp.eye(3, dtype=DTYPE)
    pose_feature = (rotation_matrix[:, 1:] - ident3).reshape(N, -1)

    # joints regressed directly from betas (no full-vertex intermediate)
    J = prepared['Jr_template'][None] + jnp.einsum(
        'nl,jkl->njk', betas, prepared['Jr_shapedirs'])                     # (N,5,3)
    _, A = batch_rigid_transform(rotation_matrix, J, PARENTS)               # (N,5,4,4)

    # entry-major layout of the top 3 rows of each relative 4x4:
    # aT_flat[(4*i + c) * N + n, j] = A[n, j, i, c]  -> contiguous (N,T) slices
    A12 = A[:, :, :3, :].reshape(N, NUM_JOINTS, 12)
    aT_flat = jnp.transpose(A12, (2, 0, 1)).reshape(12 * N, NUM_JOINTS)     # (12N,J)

    # ---- fused Pallas kernel: blendshapes + linear blend skinning ----
    params_cat = jnp.concatenate([betas, pose_feature], axis=-1)            # (N,K)
    K = params_cat.shape[-1]
    Kp = prepared['coeff_planar'].shape[1]
    if Kp > K:
        params_cat = jnp.pad(params_cat, ((0, 0), (0, Kp - K)))
    params_cat = params_cat.astype(jnp.bfloat16)                            # (N,Kp)

    verts_planar = flame_vertices_call(
        params_cat, prepared['coeff_planar'], prepared['v_template_planar'],
        prepared['wT'], aT_flat, v_tile=v_tile)                             # (3,N,Vp)
    vertices = jnp.transpose(verts_planar[:, :, :num_vertices], (1, 2, 0))  # (N,V,3)

    # landmarks (gather based — plain JAX)
    dyn_faces_idx, dyn_bary = find_dynamic_lm(
        rotation_matrix, prepared['dynamic_lm_faces_idx'],
        prepared['dynamic_lm_bary_coords'])
    dynamic_lm17 = vertices2landmarks(vertices, prepared['f'],
                                      dyn_faces_idx, dyn_bary)
    static_faces = jnp.tile(prepared['static_lm_faces_idx'][None], (N, 1))
    static_bary = jnp.tile(prepared['static_lm_bary_coords'][None], (N, 1, 1))
    static_lm68 = vertices2landmarks(vertices, prepared['f'],
                                     static_faces, static_bary)
    return vertices, dynamic_lm17, static_lm68


# ---------------------------------- main --------------------------------------
if __name__ == "__main__":
    key = jax.random.PRNGKey(0)
    keys = jax.random.split(key, 18)

    params = {
        'v_template': jax.random.normal(keys[0], (V_COUNT, 3), DTYPE) * 0.1,
        'identity_coeff': jax.random.normal(keys[1], (V_COUNT, 3, ID_DIM_FULL), DTYPE) * 0.01,
        'expression_coeff': jax.random.normal(keys[2], (V_COUNT, 3, EXP_DIM_FULL), DTYPE) * 0.01,
        'rotation_coeff': jax.random.normal(keys[3], (POSE_BASIS, V_COUNT * 3), DTYPE) * 0.01,
        'joint_regressor': jax.nn.softmax(
            jax.random.normal(keys[4], (NUM_JOINTS, V_COUNT), DTYPE), axis=-1),
        'lbs_weights': jax.nn.softmax(
            jax.random.normal(keys[5], (V_COUNT, NUM_JOINTS), DTYPE), axis=-1),
        'f': jax.random.randint(keys[6], (F_COUNT, 3), 0, V_COUNT),
        'dynamic_lm_faces_idx': jax.random.randint(keys[7], (79, 17), 0, F_COUNT),
        'dynamic_lm_bary_coords': jax.nn.softmax(
            jax.random.normal(keys[8], (79, 17, 3), DTYPE), axis=-1),
        'static_lm_faces_idx': jax.random.randint(keys[9], (68,), 0, F_COUNT),
        'static_lm_bary_coords': jax.nn.softmax(
            jax.random.normal(keys[10], (68, 3), DTYPE), axis=-1),
    }

    N = 2
    identity_params = jax.random.normal(keys[11], (N, 32), DTYPE) * 0.5
    expression_params = jax.random.normal(keys[12], (N, 16), DTYPE) * 0.5
    global_rotation = jax.random.normal(keys[13], (N, 3), DTYPE) * 0.1
    neck_rotation = jax.random.normal(keys[14], (N, 3), DTYPE) * 0.1
    jaw_rotation = jax.random.normal(keys[15], (N, 3), DTYPE) * 0.1
    eyes_rotation = jax.random.normal(keys[16], (N, 6), DTYPE) * 0.1

    v_tile = _pick_v_tile(V_COUNT)
    prepared = prepare_flame_params(params, id_dim=32, exp_dim=16, v_tile=v_tile)

    fwd = jax.jit(flame_forward, static_argnames=('v_tile', 'num_vertices'))
    vertices, dynamic_lm17, static_lm68 = fwd(
        prepared, identity_params, expression_params, global_rotation,
        neck_rotation, jaw_rotation, eyes_rotation,
        v_tile=v_tile, num_vertices=V_COUNT)
    jax.block_until_ready((vertices, dynamic_lm17, static_lm68))

    assert vertices.shape == (N, V_COUNT, 3)
    assert dynamic_lm17.shape == (N, 17, 3)
    assert static_lm68.shape == (N, 68, 3)
    # TODO(synk): faces/landmark tables are synthetic; real FLAME would load checkpoint buffers.
    print("KERNEL_OK")
</pallas_src>

<mosaic_0001>
module attributes {stable_mosaic.version = 11 : i64} {
  func.func @_flame_vertex_kernel(%arg0: i32, %arg1: memref<2x96xbf16, #tpu.memory_space<vmem>>, %arg2: memref<3x96x256xbf16, #tpu.memory_space<vmem>>, %arg3: memref<3x256xf32, #tpu.memory_space<vmem>>, %arg4: memref<5x256xf32, #tpu.memory_space<vmem>>, %arg5: memref<24x5xf32, #tpu.memory_space<vmem>>, %arg6: memref<3x2x256xf32, #tpu.memory_space<vmem>>) attributes {dimension_semantics = [#tpu.dimension_semantics<parallel>], iteration_bounds = array<i64: 2>, scalar_prefetch = 0 : i64, scratch_operands = 0 : i64, tpu.core_type = #tpu.core_type<tc>, window_params = [{pipeline_mode = #tpu.pipeline_mode<synchronous>, transform_indices = @transform_0, window_bounds = array<i64: 2, 96>}, {transform_indices = @transform_1, window_bounds = array<i64: 3, 96, 256>}, {transform_indices = @transform_2, window_bounds = array<i64: 3, 256>}, {transform_indices = @transform_3, window_bounds = array<i64: 5, 256>}, {pipeline_mode = #tpu.pipeline_mode<synchronous>, transform_indices = @transform_4, window_bounds = array<i64: 24, 5>}, {transform_indices = @transform_5, window_bounds = array<i64: 3, 2, 256>}]} {
    %c0 = arith.constant 0 : index
    %c0_0 = arith.constant 0 : index
    %0 = vector.load %arg1[%c0, %c0_0] : memref<2x96xbf16, #tpu.memory_space<vmem>>, vector<2x96xbf16>
    %c0_1 = arith.constant 0 : index
    %c0_2 = arith.constant 0 : index
    %1 = vector.load %arg3[%c0_1, %c0_2] : memref<3x256xf32, #tpu.memory_space<vmem>>, vector<3x256xf32>
    %2 = vector.extract_strided_slice %1 {offsets = [0, 0], sizes = [1, 256], strides = [1, 1]} : vector<3x256xf32> to vector<1x256xf32>
    %c0_3 = arith.constant 0 : index
    %c0_4 = arith.constant 0 : index
    %c0_5 = arith.constant 0 : index
    %3 = vector.load %arg2[%c0_3, %c0_4, %c0_5] : memref<3x96x256xbf16, #tpu.memory_space<vmem>>, vector<1x96x256xbf16>
    %4 = vector.shape_cast %3 : vector<1x96x256xbf16> to vector<96x256xbf16>
    %cst = arith.constant dense<0.000000e+00> : vector<2x256xf32>
    %5 = tpu.matmul %0, %4, %cst {dimension_numbers = #tpu.dot_dimension_numbers<[1], [0], [0], [1], [0, 0, 1, 1], [], []>} : vector<2x96xbf16>, vector<96x256xbf16>, vector<2x256xf32> -> vector<2x256xf32>
    %6 = vector.broadcast %2 : vector<1x256xf32> to vector<2x256xf32>
    %7 = arith.addf %6, %5 : vector<2x256xf32>
    %8 = vector.extract_strided_slice %1 {offsets = [1, 0], sizes = [1, 256], strides = [1, 1]} : vector<3x256xf32> to vector<1x256xf32>
    %c1 = arith.constant 1 : index
    %c0_6 = arith.constant 0 : index
    %c0_7 = arith.constant 0 : index
    %9 = vector.load %arg2[%c1, %c0_6, %c0_7] : memref<3x96x256xbf16, #tpu.memory_space<vmem>>, vector<1x96x256xbf16>
    %10 = vector.shape_cast %9 : vector<1x96x256xbf16> to vector<96x256xbf16>
    %cst_8 = arith.constant dense<0.000000e+00> : vector<2x256xf32>
    %11 = tpu.matmul %0, %10, %cst_8 {dimension_numbers = #tpu.dot_dimension_numbers<[1], [0], [0], [1], [0, 0, 1, 1], [], []>} : vector<2x96xbf16>, vector<96x256xbf16>, vector<2x256xf32> -> vector<2x256xf32>
    %12 = vector.broadcast %8 : vector<1x256xf32> to vector<2x256xf32>
    %13 = arith.addf %12, %11 : vector<2x256xf32>
    %14 = vector.extract_strided_slice %1 {offsets = [2, 0], sizes = [1, 256], strides = [1, 1]} : vector<3x256xf32> to vector<1x256xf32>
    %c2 = arith.constant 2 : index
    %c0_9 = arith.constant 0 : index
    %c0_10 = arith.constant 0 : index
    %15 = vector.load %arg2[%c2, %c0_9, %c0_10] : memref<3x96x256xbf16, #tpu.memory_space<vmem>>, vector<1x96x256xbf16>
    %16 = vector.shape_cast %15 : vector<1x96x256xbf16> to vector<96x256xbf16>
    %cst_11 = arith.constant dense<0.000000e+00> : vector<2x256xf32>
    %17 = tpu.matmul %0, %16, %cst_11 {dimension_numbers = #tpu.dot_dimension_numbers<[1], [0], [0], [1], [0, 0, 1, 1], [], []>} : vector<2x96xbf16>, vector<96x256xbf16>, vector<2x256xf32> -> vector<2x256xf32>
    %18 = vector.broadcast %14 : vector<1x256xf32> to vector<2x256xf32>
    %19 = arith.addf %18, %17 : vector<2x256xf32>
    %c0_12 = arith.constant 0 : index
    %c0_13 = arith.constant 0 : index
    %20 = vector.load %arg4[%c0_12, %c0_13] : memref<5x256xf32, #tpu.memory_space<vmem>>, vector<5x256xf32>
    %c0_14 = arith.constant 0 : index
    %c0_15 = arith.constant 0 : index
    %21 = vector.load %arg5[%c0_14, %c0_15] : memref<24x5xf32, #tpu.memory_space<vmem>>, vector<24x5xf32>
    %22 = vector.extract_strided_slice %21 {offsets = [0, 0], sizes = [24, 1], strides = [1, 1]} : vector<24x5xf32> to vector<24x1xf32>
    %23 = vector.extract_strided_slice %20 {offsets = [0, 0], sizes = [1, 256], strides = [1, 1]} : vector<5x256xf32> to vector<1x256xf32>
    %24 = vector.broadcast %22 : vector<24x1xf32> to vector<24x256xf32>
    %25 = vector.broadcast %23 : vector<1x256xf32> to vector<24x256xf32>
    %26 = arith.mulf %24, %25 : vector<24x256xf32>
    %27 = vector.extract_strided_slice %21 {offsets = [0, 1], sizes = [24, 1], strides = [1, 1]} : vector<24x5xf32> to vector<24x1xf32>
    %28 = vector.extract_strided_slice %20 {offsets = [1, 0], sizes = [1, 256], strides = [1, 1]} : vector<5x256xf32> to vector<1x256xf32>
    %29 = vector.broadcast %27 : vector<24x1xf32> to vector<24x256xf32>
    %30 = vector.broadcast %28 : vector<1x256xf32> to vector<24x256xf32>
    %31 = arith.mulf %29, %30 : vector<24x256xf32>
    %32 = arith.addf %26, %31 : vector<24x256xf32>
    %33 = vector.extract_strided_slice %21 {offsets = [0, 2], sizes = [24, 1], strides = [1, 1]} : vector<24x5xf32> to vector<24x1xf32>
    %34 = vector.extract_strided_slice %20 {offsets = [2, 0], sizes = [1, 256], strides = [1, 1]} : vector<5x256xf32> to vector<1x256xf32>
    %35 = vector.broadcast %33 : vector<24x1xf32> to vector<24x256xf32>
    %36 = vector.broadcast %34 : vector<1x256xf32> to vector<24x256xf32>
    %37 = arith.mulf %35, %36 : vector<24x256xf32>
    %38 = arith.addf %32, %37 : vector<24x256xf32>
    %39 = vector.extract_strided_slice %21 {offsets = [0, 3], sizes = [24, 1], strides = [1, 1]} : vector<24x5xf32> to vector<24x1xf32>
    %40 = vector.extract_strided_slice %20 {offsets = [3, 0], sizes = [1, 256], strides = [1, 1]} : vector<5x256xf32> to vector<1x256xf32>
    %41 = vector.broadcast %39 : vector<24x1xf32> to vector<24x256xf32>
    %42 = vector.broadcast %40 : vector<1x256xf32> to vector<24x256xf32>
    %43 = arith.mulf %41, %42 : vector<24x256xf32>
    %44 = arith.addf %38, %43 : vector<24x256xf32>
    %45 = vector.extract_strided_slice %21 {offsets = [0, 4], sizes = [24, 1], strides = [1, 1]} : vector<24x5xf32> to vector<24x1xf32>
    %46 = vector.extract_strided_slice %20 {offsets = [4, 0], sizes = [1, 256], strides = [1, 1]} : vector<5x256xf32> to vector<1x256xf32>
    %47 = vector.broadcast %45 : vector<24x1xf32> to vector<24x256xf32>
    %48 = vector.broadcast %46 : vector<1x256xf32> to vector<24x256xf32>
    %49 = arith.mulf %47, %48 : vector<24x256xf32>
    %50 = arith.addf %44, %49 : vector<24x256xf32>
    %51 = vector.extract_strided_slice %50 {offsets = [0, 0], sizes = [2, 256], strides = [1, 1]} : vector<24x256xf32> to vector<2x256xf32>
    %52 = arith.mulf %51, %7 : vector<2x256xf32>
    %53 = vector.extract_strided_slice %50 {offsets = [2, 0], sizes = [2, 256], strides = [1, 1]} : vector<24x256xf32> to vector<2x256xf32>
    %54 = arith.mulf %53, %13 : vector<2x256xf32>
    %55 = arith.addf %52, %54 : vector<2x256xf32>
    %56 = vector.extract_strided_slice %50 {offsets = [4, 0], sizes = [2, 256], strides = [1, 1]} : vector<24x256xf32> to vector<2x256xf32>
    %57 = arith.mulf %56, %19 : vector<2x256xf32>
    %58 = arith.addf %55, %57 : vector<2x256xf32>
    %59 = vector.extract_strided_slice %50 {offsets = [6, 0], sizes = [2, 256], strides = [1, 1]} : vector<24x256xf32> to vector<2x256xf32>
    %60 = arith.addf %58, %59 : vector<2x256xf32>
    %c0_16 = arith.constant 0 : index
    %c0_17 = arith.constant 0 : index
    %c0_18 = arith.constant 0 : index
    %61 = vector.load %arg6[%c0_16, %c0_17, %c0_18] : memref<3x2x256xf32, #tpu.memory_space<vmem>>, vector<1x2x256xf32>
    %62 = vector.shape_cast %61 : vector<1x2x256xf32> to vector<2x256xf32>
    %63 = vector.shape_cast %60 : vector<2x256xf32> to vector<1x2x256xf32>
    tpu.vector_store %arg6[%c0_16, %c0_17, %c0_18], %63 {strides = array<i32>} : memref<3x2x256xf32, #tpu.memory_space<vmem>>, vector<1x2x256xf32>,
    %64 = vector.extract_strided_slice %50 {offsets = [8, 0], sizes = [2, 256], strides = [1, 1]} : vector<24x256xf32> to vector<2x256xf32>
    %65 = arith.mulf %64, %7 : vector<2x256xf32>
    %66 = vector.extract_strided_slice %50 {offsets = [10, 0], sizes = [2, 256], strides = [1, 1]} : vector<24x256xf32> to vector<2x256xf32>
    %67 = arith.mulf %66, %13 : vector<2x256xf32>
    %68 = arith.addf %65, %67 : vector<2x256xf32>
    %69 = vector.extract_strided_slice %50 {offsets = [12, 0], sizes = [2, 256], strides = [1, 1]} : vector<24x256xf32> to vector<2x256xf32>
    %70 = arith.mulf %69, %19 : vector<2x256xf32>
    %71 = arith.addf %68, %70 : vector<2x256xf32>
    %72 = vector.extract_strided_slice %50 {offsets = [14, 0], sizes = [2, 256], strides = [1, 1]} : vector<24x256xf32> to vector<2x256xf32>
    %73 = arith.addf %71, %72 : vector<2x256xf32>
    %c1_19 = arith.constant 1 : index
    %c0_20 = arith.constant 0 : index
    %c0_21 = arith.constant 0 : index
    %74 = vector.load %arg6[%c1_19, %c0_20, %c0_21] : memref<3x2x256xf32, #tpu.memory_space<vmem>>, vector<1x2x256xf32>
    %75 = vector.shape_cast %74 : vector<1x2x256xf32> to vector<2x256xf32>
    %76 = vector.shape_cast %73 : vector<2x256xf32> to vector<1x2x256xf32>
    tpu.vector_store %arg6[%c1_19, %c0_20, %c0_21], %76 {strides = array<i32>} : memref<3x2x256xf32, #tpu.memory_space<vmem>>, vector<1x2x256xf32>,
    %77 = vector.extract_strided_slice %50 {offsets = [16, 0], sizes = [2, 256], strides = [1, 1]} : vector<24x256xf32> to vector<2x256xf32>
    %78 = arith.mulf %77, %7 : vector<2x256xf32>
    %79 = vector.extract_strided_slice %50 {offsets = [18, 0], sizes = [2, 256], strides = [1, 1]} : vector<24x256xf32> to vector<2x256xf32>
    %80 = arith.mulf %79, %13 : vector<2x256xf32>
    %81 = arith.addf %78, %80 : vector<2x256xf32>
    %82 = vector.extract_strided_slice %50 {offsets = [20, 0], sizes = [2, 256], strides = [1, 1]} : vector<24x256xf32> to vector<2x256xf32>
    %83 = arith.mulf %82, %19 : vector<2x256xf32>
    %84 = arith.addf %81, %83 : vector<2x256xf32>
    %85 = vector.extract_strided_slice %50 {offsets = [22, 0], sizes = [2, 256], strides = [1, 1]} : vector<24x256xf32> to vector<2x256xf32>
    %86 = arith.addf %84, %85 : vector<2x256xf32>
    %c2_22 = arith.constant 2 : index
    %c0_23 = arith.constant 0 : index
    %c0_24 = arith.constant 0 : index
    %87 = vector.load %arg6[%c2_22, %c0_23, %c0_24] : memref<3x2x256xf32, #tpu.memory_space<vmem>>, vector<1x2x256xf32>
    %88 = vector.shape_cast %87 : vector<1x2x256xf32> to vector<2x256xf32>
    %89 = vector.shape_cast %86 : vector<2x256xf32> to vector<1x2x256xf32>
    tpu.vector_store %arg6[%c2_22, %c0_23, %c0_24], %89 {strides = array<i32>} : memref<3x2x256xf32, #tpu.memory_space<vmem>>, vector<1x2x256xf32>,
    return
  }
  func.func @transform_0(%arg0: i32) -> (i32, i32) {
    %c0_i32 = arith.constant 0 : i32
    %c0_i32_0 = arith.constant 0 : i32
    %c0_i32_1 = arith.constant 0 : i32
    return %c0_i32, %c0_i32_0 : i32, i32
  }
  func.func @transform_1(%arg0: i32) -> (i32, i32, i32) {
    %c0_i32 = arith.constant 0 : i32
    %c0_i32_0 = arith.constant 0 : i32
    %c0_i32_1 = arith.constant 0 : i32
    return %c0_i32, %c0_i32_0, %arg0 : i32, i32, i32
  }
  func.func @transform_2(%arg0: i32) -> (i32, i32) {
    %c0_i32 = arith.constant 0 : i32
    %c0_i32_0 = arith.constant 0 : i32
    return %c0_i32, %arg0 : i32, i32
  }
  func.func @transform_3(%arg0: i32) -> (i32, i32) {
    %c0_i32 = arith.constant 0 : i32
    %c0_i32_0 = arith.constant 0 : i32
    return %c0_i32, %arg0 : i32, i32
  }
  func.func @transform_4(%arg0: i32) -> (i32, i32) {
    %c0_i32 = arith.constant 0 : i32
    %c0_i32_0 = arith.constant 0 : i32
    %c0_i32_1 = arith.constant 0 : i32
    return %c0_i32, %c0_i32_0 : i32, i32
  }
  func.func @transform_5(%arg0: i32) -> (i32, i32, i32) {
    %c0_i32 = arith.constant 0 : i32
    %c0_i32_0 = arith.constant 0 : i32
    %c0_i32_1 = arith.constant 0 : i32
    return %c0_i32, %c0_i32_0, %arg0 : i32, i32, i32
  }
}

</mosaic_0001>

<bundles_post_ra>
// kernel: flame_forward.1
= control target key start
LH: loop header
LB: loop body
LE: loop exit
PB: predicated region body
PF: predicated region fallthrough
CT: control target
= control target key end

     0   :  { %s1528_s18 = smov 0   ;;  %s1530_s19 = smov 0   ;;  %s1832_s0 = inlined_call_operand.vmem [shape: bf16[2,96], index: 0, kind: input, shape index: {}]   ;;  %s1833_s1 = inlined_call_operand.vmem [shape: bf16[3,96,512], index: 1, kind: input, shape index: {}]   ;;  %s1834_s2 = inlined_call_operand.vmem [shape: f32[3,512], index: 2, kind: input, shape index: {}]   ;;  %s1835_s3 = inlined_call_operand.vmem [shape: f32[5,512], index: 3, kind: input, shape index: {}]   ;;  %s1836_s4 = inlined_call_operand.vmem [shape: f32[24,5], index: 4, kind: input, shape index: {}]   ;;  %s1837_s5 = inlined_call_operand.vmem [shape: f32[3,2,512], index: 5, kind: output, shape index: {}]  }
   0x1   :  { %s1532_s20 = smov 0  }
   0x2 LB: > { %s1544_s21 = sadd.s32 4294967295, %s1491_s20   ;;  %s1547_s22 = sadd.s32 1, %s1491_s20   ;;  %s1491_s20 = sphi %s1532_s20, %s1841_s20   ;;  %s1487_s19 = sphi %s1530_s19, %s1840_s19   ;;  %s1483_s18 = sphi %s1528_s18, %s1839_s18  }
   0x3   : > { %s40_s23 = ssub.s32 %s1491_s20, %s1547_s22  ;;  %s43_s24 = sadd.s32 1, %s1487_s19 }
   0x4   : > { %p41_p0 = scmp.eq.s32.totalorder %s40_s23, 0  ;;  %p50_p1 = scmp.ne.s32.totalorder %s1487_s19, %s1483_s18 }
   0x5   : > { %p51_p2 = scmp.eq.s32.totalorder %s1491_s20, 0  ;;  %p153_p3 = scmp.eq.s32.totalorder %s1544_s21, 1 }
   0x6   : > { %s1557_s25 = scalar_select %p41_p0, %s1487_s19, %s43_s24  }
   0x7   : > { %p52_p4 = por %p51_p2, %p50_p1  ;;  %p1559_p5 = por %p153_p3, %p50_p1 }
   0x8   : > { %p1291_p6 = scmp.ge.s32.totalorder %s1491_s20, 2 }
   0xa   : > { %181 = sbr.rel (%p1291_p6) target bundleno = 39 (0x27), region = 24 }
  0x11   : > { %184 = sbr.rel (!%p52_p4) target bundleno = 39 (0x27), region = 28  ;;  %s186_s27 = sand.u32 (%p52_p4), 1, %s1487_s19  }
  0x12   : > { %s1369_s28 = sshll.u32 (%p52_p4), %s1491_s20, 3  ;;  %s1373_s29 = smul.u32 (%p52_p4), 288, %s186_s27 }
  0x13   : > { %s1569_s7 = scalar_lea.vmem (%p52_p4), %s1833_s1, %s1369_s28 }
  0x14   : > { %v289_v0 = vld [vmem:[%s1569_s7] sm:$0xff] (%p52_p4)  ;;  %v291_v1 = vld [vmem:[%s1569_s7 + $0x10] sm:$0xff] (%p52_p4)  ;;  %s1577_s8 = scalar_lea.vmem (%p52_p4), [#allocation2], %s1373_s29 }
  0x15   : > { %v293_v2 = vld [vmem:[%s1569_s7 + $0x20] sm:$0xff] (%p52_p4)  ;;  %v295_v3 = vld [vmem:[%s1569_s7 + $0x30] sm:$0xff] (%p52_p4)  ;;  %290 = vst [vmem:[%s1577_s8] sm:$0xff] (%p52_p4), %v289_v0  ;;  %292 = vst [vmem:[%s1577_s8 + $0x8] sm:$0xff] (%p52_p4), %v291_v1 }
  0x16   : > { %v297_v4 = vld [vmem:[%s1569_s7 + $0x40] sm:$0xff] (%p52_p4)  ;;  %v299_v5 = vld [vmem:[%s1569_s7 + $0x50] sm:$0xff] (%p52_p4)  ;;  %294 = vst [vmem:[%s1577_s8 + $0x10] sm:$0xff] (%p52_p4), %v293_v2  ;;  %296 = vst [vmem:[%s1577_s8 + $0x18] sm:$0xff] (%p52_p4), %v295_v3 }
  0x17   : > { %298 = vst [vmem:[%s1577_s8 + $0x20] sm:$0xff] (%p52_p4), %v297_v4  ;;  %300 = vst [vmem:[%s1577_s8 + $0x28] sm:$0xff] (%p52_p4), %v299_v5  ;;  %v301_v6 = vld [vmem:[%s1569_s7 + $0x60] sm:$0xff] (%p52_p4)  ;;  %v303_v7 = vld [vmem:[%s1569_s7 + $0x70] sm:$0xff] (%p52_p4) }
  0x18   : > { %v305_v8 = vld [vmem:[%s1569_s7 + $0x80] sm:$0xff]  ;;  %302 = vst [vmem:[%s1577_s8 + $0x30] sm:$0xff] %v301_v6  ;;  %304 = vst [vmem:[%s1577_s8 + $0x38] sm:$0xff] %v303_v7  ;;  %v307_v9 = vld [vmem:[%s1569_s7 + $0x90] sm:$0xff] }
  0x19   : > { %306 = vst [vmem:[%s1577_s8 + $0x40] sm:$0xff] %v305_v8  ;;  %v309_v10 = vld [vmem:[%s1569_s7 + $0xa0] sm:$0xff]  ;;  %v311_v11 = vld [vmem:[%s1569_s7 + $0xb0] sm:$0xff]  ;;  %308 = vst [vmem:[%s1577_s8 + $0x48] sm:$0xff] %v307_v9 }
  0x1a   : > { %310 = vst [vmem:[%s1577_s8 + $0x50] sm:$0xff] %v309_v10  ;;  %312 = vst [vmem:[%s1577_s8 + $0x58] sm:$0xff] %v311_v11  ;;  %v313_v12 = vld [vmem:[%s1569_s7 + $0xc0] sm:$0xff]  ;;  %v315_v13 = vld [vmem:[%s1569_s7 + $0xd0] sm:$0xff] }
  0x1b   : > { %v317_v14 = vld [vmem:[%s1569_s7 + $0xe0] sm:$0xff]  ;;  %314 = vst [vmem:[%s1577_s8 + $0x60] sm:$0xff] %v313_v12  ;;  %316 = vst [vmem:[%s1577_s8 + $0x68] sm:$0xff] %v315_v13  ;;  %v319_v15 = vld [vmem:[%s1569_s7 + $0xf0] sm:$0xff] }
  0x1c   : > { %318 = vst [vmem:[%s1577_s8 + $0x70] sm:$0xff] %v317_v14  ;;  %v321_v16 = vld [vmem:[%s1569_s7 + $0x100] sm:$0xff]  ;;  %v323_v17 = vld [vmem:[%s1569_s7 + $0x110] sm:$0xff]  ;;  %320 = vst [vmem:[%s1577_s8 + $0x78] sm:$0xff] %v319_v15 }
  0x1d   : > { %322 = vst [vmem:[%s1577_s8 + $0x80] sm:$0xff] %v321_v16  ;;  %324 = vst [vmem:[%s1577_s8 + $0x88] sm:$0xff] %v323_v17  ;;  %v325_v18 = vld [vmem:[%s1569_s7 + $0x120] sm:$0xff]  ;;  %v327_v19 = vld [vmem:[%s1569_s7 + $0x130] sm:$0xff] }
  0x1e   : > { %v329_v20 = vld [vmem:[%s1569_s7 + $0x140] sm:$0xff]  ;;  %326 = vst [vmem:[%s1577_s8 + $0x90] sm:$0xff] %v325_v18  ;;  %328 = vst [vmem:[%s1577_s8 + $0x98] sm:$0xff] %v327_v19  ;;  %v331_v21 = vld [vmem:[%s1569_s7 + $0x150] sm:$0xff] }
  0x1f   : > { %330 = vst [vmem:[%s1577_s8 + $0xa0] sm:$0xff] %v329_v20  ;;  %v333_v22 = vld [vmem:[%s1569_s7 + $0x160] sm:$0xff]  ;;  %v335_v23 = vld [vmem:[%s1569_s7 + $0x170] sm:$0xff]  ;;  %332 = vst [vmem:[%s1577_s8 + $0xa8] sm:$0xff] %v331_v21 }
  0x20   : > { %334 = vst [vmem:[%s1577_s8 + $0xb0] sm:$0xff] %v333_v22  ;;  %336 = vst [vmem:[%s1577_s8 + $0xb8] sm:$0xff] %v335_v23  ;;  %v337_v24 = vld [vmem:[%s1569_s7 + $0x180] sm:$0xff]  ;;  %v339_v25 = vld [vmem:[%s1569_s7 + $0x190] sm:$0xff] }
  0x21   : > { %v341_v26 = vld [vmem:[%s1569_s7 + $0x1a0] sm:$0xff]  ;;  %338 = vst [vmem:[%s1577_s8 + $0xc0] sm:$0xff] %v337_v24  ;;  %340 = vst [vmem:[%s1577_s8 + $0xc8] sm:$0xff] %v339_v25  ;;  %v343_v27 = vld [vmem:[%s1569_s7 + $0x1b0] sm:$0xff] }
  0x22   : > { %342 = vst [vmem:[%s1577_s8 + $0xd0] sm:$0xff] %v341_v26  ;;  %v345_v28 = vld [vmem:[%s1569_s7 + $0x1c0] sm:$0xff]  ;;  %v347_v29 = vld [vmem:[%s1569_s7 + $0x1d0] sm:$0xff]  ;;  %344 = vst [vmem:[%s1577_s8 + $0xd8] sm:$0xff] %v343_v27 }
  0x23   : > { %346 = vst [vmem:[%s1577_s8 + $0xe0] sm:$0xff] %v345_v28  ;;  %348 = vst [vmem:[%s1577_s8 + $0xe8] sm:$0xff] %v347_v29  ;;  %v349_v30 = vld [vmem:[%s1569_s7 + $0x1e0] sm:$0xff]  ;;  %v351_v31 = vld [vmem:[%s1569_s7 + $0x1f0] sm:$0xff] }
  0x24   : > { %v353_v32 = vld [vmem:[%s1569_s7 + $0x200] sm:$0xff]  ;;  %350 = vst [vmem:[%s1577_s8 + $0xf0] sm:$0xff] %v349_v30  ;;  %352 = vst [vmem:[%s1577_s8 + $0xf8] sm:$0xff] %v351_v31  ;;  %v355_v33 = vld [vmem:[%s1569_s7 + $0x210] sm:$0xff] }
  0x25   : > { %354 = vst [vmem:[%s1577_s8 + $0x100] sm:$0xff] %v353_v32  ;;  %v357_v34 = vld [vmem:[%s1569_s7 + $0x220] sm:$0xff]  ;;  %v359_v35 = vld [vmem:[%s1569_s7 + $0x230] sm:$0xff]  ;;  %356 = vst [vmem:[%s1577_s8 + $0x108] sm:$0xff] %v355_v33 }
  0x26   : > { %358 = vst [vmem:[%s1577_s8 + $0x110] sm:$0xff] %v357_v34  ;;  %360 = vst [vmem:[%s1577_s8 + $0x118] sm:$0xff] %v359_v35 }
  0x27 PF: > { %p1294_p7 = scmp.ge.s32.totalorder %s1491_s20, 1  ;;  %p383_p8 = scmp.lt.s32.totalorder %s1491_s20, 3 }
  0x29   : > { %p384_p9 = pnand %p1294_p7, %p383_p8 }
  0x2a   : > { %s390_s9 = sand.u32 (!%p384_p9), 1, %s1483_s18   ;;  %v1651_v36 = vld [vmem:[%s1836_s4 + $0x10] sm:$0xff] (!%p384_p9)  ;;  %v1493_v37 = vmov (!%p384_p9), 0   ;;  %v1661_v38 = vld [vmem:[%s1836_s4] sm:$0xff] (!%p384_p9)  ;;  %v1673_v41 = vld [vmem:[%s1836_s4 + $0x8] sm:$0xff] (!%p384_p9)  ;;  %v1494_v45 = vmov (!%p384_p9), 1   ;;  %v561_v22 = vlaneseq (!%p384_p9) }
  0x2b   : > { %387 = sbr.rel (%p384_p9) target bundleno = 335 (0x14f), region = 74  ;;  %551 = vmatprep.mubr.bf16.mxu0 (!%p384_p9), %v1493_v37  ;;  %686 = vmatprep.mubr.bf16.mxu1 (!%p384_p9), %v1493_v37  ;;  %v1495_v59 = vmov (!%p384_p9), 2   ;;  %v1496_v3 = vmov (!%p384_p9), 3   ;;  %v441_v4 = vld [vmem:[%s1832_s0] sm:$0x1] (!%p384_p9)  ;;  %vm515_vm0 = vcmask (!%p384_p9), 785408  }
  0x2c   : > { %s1374_s12 = smul.u32 (!%p384_p9), 288, %s390_s9  ;;  %1406 = vset.pattern.permute.xlu1 (!%p384_p9), %v1493_v37  ;;  %1405 = vset.pattern.permute.xlu0 (!%p384_p9), %v1493_v37  ;;  %v1497_v9 = vmov (!%p384_p9), 4   ;;  %s1295_s24 = sshll.u32 (!%p384_p9), %s1544_s21, 1  ;;  %v1733_v25 = vshrl.u32 (!%p384_p9), %v561_v22, 7 }
  0x2d   : > { %866 = vperm.xlu1 (!%p384_p9), %1406, %v1651_v36   ;;  %856 = vperm.xlu0 (!%p384_p9), %1405, %v1661_v38   ;;  %p428_p10 = scmp.lt.s32.totalorder (!%p384_p9), %s1295_s24, 3  ;;  %s1375_s11 = smul.u32 (!%p384_p9), 12, %s390_s9 }
  0x2e   : > { %s1666_s15 = scalar_lea.vmem (!%p384_p9), [#allocation2], %s1374_s12  ;;  %v1739_v27 = vsub.s32 (!%p384_p9), 0, %v1733_v25  ;;  %v1742_v28 = vsub.s32 (!%p384_p9), 1, %v1733_v25  ;;  %v1745_v32 = vsub.s32 (!%p384_p9), 2, %v1733_v25 }
  0x2f   : > { %v1415_v39 = vld [vmem:[%s1666_s15 + $0x4] ss:$8 sps:$4 sm:$0xff] (!%p384_p9)   ;;  %v1419_v42 = vld [vmem:[%s1666_s15] ss:$8 sps:$4 sm:$0xff] (!%p384_p9)   ;;  %v1421_v44 = vld [vmem:[%s1666_s15 + $0x14] ss:$8 sps:$4 sm:$0xff] (!%p384_p9)  }
  0x30   : > { %v1417_v40 = vld [vmem:[%s1666_s15 + $0x64] ss:$8 sps:$4 sm:$0xff] (!%p384_p9)   ;;  %519 = vmatprep.subr.bf16.mxu0 (!%p384_p9), %v1415_v39  ;;  %v1420_v43 = vld [vmem:[%s1666_s15 + $0x60] ss:$8 sps:$4 sm:$0xff] (!%p384_p9)   ;;  %v1423_v46 = vld [vmem:[%s1666_s15 + $0x74] ss:$8 sps:$4 sm:$0xff] (!%p384_p9)  }
  0x31   : > { %654 = vmatprep.subr.bf16.mxu1 (!%p384_p9), %v1417_v40  ;;  %1407 = vset.pattern.permute.xlu1 (!%p384_p9), %v1494_v45  ;;  %v1425_v47 = vld [vmem:[%s1666_s15 + $0x10] ss:$8 sps:$4 sm:$0xff] (!%p384_p9)   ;;  %v1427_v49 = vld [vmem:[%s1666_s15 + $0x24] ss:$8 sps:$4 sm:$0xff] (!%p384_p9)   ;;  %v1431_v51 = vld [vmem:[%s1666_s15 + $0x20] ss:$8 sps:$4 sm:$0xff] (!%p384_p9)  }
  0x32   : > { %520 = vmatpush1.bf16.msra.mxu0 %v1419_v42  ;;  %655 = vmatpush1.bf16.msra.mxu1 %v1420_v43  ;;  %v1426_v48 = vld [vmem:[%s1666_s15 + $0x70] ss:$8 sps:$4 sm:$0xff]   ;;  %v1429_v50 = vld [vmem:[%s1666_s15 + $0x84] ss:$8 sps:$4 sm:$0xff]   ;;  %v1432_v52 = vld [vmem:[%s1666_s15 + $0x80] ss:$8 sps:$4 sm:$0xff]  }
  0x33   : > { %521 = vmatprep.subr.bf16.mxu0 %v1421_v44  ;;  %884 = vperm.xlu1 %1407, %v1661_v38   ;;  %v1433_v53 = vld [vmem:[%s1666_s15 + $0x34] ss:$8 sps:$4 sm:$0xff]   ;;  %v1437_v55 = vld [vmem:[%s1666_s15 + $0x30] ss:$8 sps:$4 sm:$0xff]   ;;  %v1439_v57 = vld [vmem:[%s1666_s15 + $0x44] ss:$8 sps:$4 sm:$0xff]  }
  0x34   : > { %656 = vmatprep.subr.bf16.mxu1 %v1423_v46  ;;  %861 = vperm.xlu0 %1405, %v1673_v41   ;;  %v1435_v54 = vld [vmem:[%s1666_s15 + $0x94] ss:$8 sps:$4 sm:$0xff]   ;;  %v1438_v56 = vld [vmem:[%s1666_s15 + $0x90] ss:$8 sps:$4 sm:$0xff]   ;;  %v1441_v58 = vld [vmem:[%s1666_s15 + $0xa4] ss:$8 sps:$4 sm:$0xff]  }
  0x35   : > { %v1443_v60 = vld [vmem:[%s1666_s15 + $0x40] ss:$8 sps:$4 sm:$0xff]   ;;  %v1445_v62 = vld [vmem:[%s1666_s15 + $0x54] ss:$8 sps:$4 sm:$0xff]   ;;  %v1449_v0 = vld [vmem:[%s1666_s15 + $0x50] ss:$8 sps:$4 sm:$0xff]  }
  0x36   : > { %522 = vmatpush1.bf16.msra.mxu0 %v1425_v47  ;;  %657 = vmatpush1.bf16.msra.mxu1 %v1426_v48  ;;  %v1444_v61 = vld [vmem:[%s1666_s15 + $0xa0] ss:$8 sps:$4 sm:$0xff]   ;;  %v1447_v63 = vld [vmem:[%s1666_s15 + $0xb4] ss:$8 sps:$4 sm:$0xff]   ;;  %v1450_v1 = vld [vmem:[%s1666_s15 + $0xb0] ss:$8 sps:$4 sm:$0xff]  }
  0x37   : > { %523 = vmatprep.subr.bf16.mxu0 %v1427_v49  ;;  %658 = vmatprep.subr.bf16.mxu1 %v1429_v50  ;;  %v1453_v2 = vld [vmem:[%s1666_s15 + $0xc4] ss:$8 sps:$4 sm:$0xff]   ;;  %v1451_v5 = vld [vmem:[%s1666_s15 + $0xc0] ss:$8 sps:$4 sm:$0xff]   ;;  %v1456_v6 = vld [vmem:[%s1666_s15 + $0xd4] ss:$8 sps:$4 sm:$0xff]  }
  0x38   : > { %892 = vperm.xlu1 %1407, %v1651_v36   ;;  %1408 = vset.pattern.permute.xlu0 %v1494_v45  ;;  %v1454_v7 = vld [vmem:[%s1666_s15 + $0xd0] ss:$8 sps:$4 sm:$0xff]   ;;  %v1459_v8 = vld [vmem:[%s1666_s15 + $0xe4] ss:$8 sps:$4 sm:$0xff]   ;;  %v1457_v10 = vld [vmem:[%s1666_s15 + $0xe0] ss:$8 sps:$4 sm:$0xff]  }
  0x39   : > { %888 = vperm.xlu0 %1408, %v1673_v41   ;;  %v1462_v11 = vld [vmem:[%s1666_s15 + $0xf4] ss:$8 sps:$4 sm:$0xff]   ;;  %v1460_v12 = vld [vmem:[%s1666_s15 + $0xf0] ss:$8 sps:$4 sm:$0xff]   ;;  %v1465_v13 = vld [vmem:[%s1666_s15 + $0x104] ss:$8 sps:$4 sm:$0xff]  }
  0x3a   : > { %524 = vmatpush1.bf16.msra.mxu0 %v1431_v51  ;;  %659 = vmatpush1.bf16.msra.mxu1 %v1432_v52  ;;  %v1463_v14 = vld [vmem:[%s1666_s15 + $0x100] ss:$8 sps:$4 sm:$0xff]   ;;  %v1468_v15 = vld [vmem:[%s1666_s15 + $0x114] ss:$8 sps:$4 sm:$0xff]   ;;  %v1466_v16 = vld [vmem:[%s1666_s15 + $0x110] ss:$8 sps:$4 sm:$0xff]  }
  0x3b   : > { %525 = vmatprep.subr.bf16.mxu0 %v1433_v53  ;;  %660 = vmatprep.subr.bf16.mxu1 %v1435_v54  ;;  %s1843_s24 = smov (!%p428_p10, %s1295_s24), 3  ;;  %v961_v43 = vsub.s32 3, %v1733_v25  ;;  %s425_s12 = scalar_lea.vmem [#allocation3], %s1375_s11 }
  0x3c   : > { %1409 = vset.pattern.permute.xlu1 %v1495_v59  ;;  %s1298_s27 = sshll.u32 %s1843_s24, 3  ;;  %s1296_s6 = sshll.u32 %s1843_s24, 2 }
  0x3d   : > { %916 = vperm.xlu1 %1409, %v1661_v38   ;;  %1410 = vset.pattern.permute.xlu0 %v1495_v59  ;;  %s437_s30 = scalar_lea.vmem %s1835_s3, %s1298_s27  ;;  %s431_s10 = scalar_lea.vmem %s1834_s2, %s1296_s6 }
  0x3e   : > { %526 = vmatpush1.bf16.msra.mxu0 %v1437_v55  ;;  %661 = vmatpush1.bf16.msra.mxu1 %v1438_v56  ;;  %v849_v29 = vld [vmem:[%s437_s30] sm:$0x1f]  ;;  %v850_v31 = vld [vmem:[%s437_s30 + $0x8] sm:$0x1f]  ;;  %s1372_s18 = sshll.u32 (%p1559_p5), %s1544_s21, 2 }
  0x3f   : > { %527 = vmatprep.subr.bf16.mxu0 %v1439_v57  ;;  %662 = vmatprep.subr.bf16.mxu1 %v1441_v58  ;;  %v872_v33 = vrot.slane %v849_v29, %v1739_v27  ;;  %v898_v34 = vrot.slane %v849_v29, %v1742_v28  ;;  %v934_v49 = vrot.slane %v850_v31, %v1745_v32  ;;  %s1160_s14 = scalar_lea.vmem (%p1559_p5), %s1837_s5, %s1372_s18 }
  0x40   : > { %920 = vperm.xlu0 %1410, %v1673_v41   ;;  %v962_v59 = vrot.slane %v849_v29, %v961_v43 }
  0x41   : > { %924 = vperm.xlu1 %1409, %v1651_v36  }
  0x42   : > { %528 = vmatpush1.bf16.msra.mxu0 %v1443_v60  ;;  %663 = vmatpush1.bf16.msra.mxu1 %v1444_v61  ;;  %v567_v60 = vsub.s32 4, %v1733_v25 }
  0x43   : > { %529 = vmatprep.subr.bf16.mxu0 %v1445_v62  ;;  %664 = vmatprep.subr.bf16.mxu1 %v1447_v63  ;;  %v966_v63 = vrot.slane %v850_v31, %v961_v43 }
  0x44   : > { %1412 = vset.pattern.permute.xlu0 %v1496_v3 }
  0x45   : > { %1411 = vset.pattern.permute.xlu1 %v1496_v3  ;;  %952 = vperm.xlu0 %1412, %v1673_v41  }
  0x46   : > { %530 = vmatpush1.bf16.msra.mxu0 %v1449_v0  ;;  %665 = vmatpush1.bf16.msra.mxu1 %v1450_v1  ;;  %v701_v0 = vsub.s32 5, %v1733_v25 }
  0x47   : > { %788 = vmatprep.subr.bf16.mxu0 %v1453_v2  ;;  %948 = vperm.xlu1 %1411, %v1661_v38  }
  0x49   : > { %1311 = vmatmul.mubr.msk.bf16.vlgmr.msra.gmra.mrb[0].mxu0 %vm515_vm0, %v441_v4  ;;  %1336 = vmatmul.mubr.msk.bf16.vlgmr.msra.gmra.mrb[0].mxu1 %vm515_vm0, %v441_v4 }
  0x4a   : > { %789 = vmatpush1.bf16.msra.mxu0 %v1451_v5  ;;  %820 = vmatprep.mubr.bf16.mxu0 %v1493_v37  ;;  %v902_v37 = vrot.slane %v850_v31, %v1742_v28 }
  0x4b   : > { %790 = vmatprep.subr.bf16.mxu0 %v1456_v6  ;;  %956 = vperm.xlu1 %1411, %v1651_v36   ;;  %v1760_v6 = vld [vmem:[%s431_s10] sm:$0x77] }
  0x4c   : > { %1414 = vset.pattern.permute.xlu0 %v1497_v9 }
  0x4d   : > { %984 = vperm.xlu0 %1414, %v1673_v41   ;;  %v930_v41 = vrot.slane %v849_v29, %v1745_v32 }
  0x4e   : > { %791 = vmatpush1.bf16.msra.mxu0 %v1454_v7 }
  0x4f   : > { %792 = vmatprep.subr.bf16.mxu0 %v1459_v8  ;;  %1413 = vset.pattern.permute.xlu1 %v1497_v9 }
  0x50   : > { %980 = vperm.xlu1 %1413, %v1661_v38  }
  0x52   : > { %793 = vmatpush1.bf16.msra.mxu0 %v1457_v10 }
  0x53   : > { %794 = vmatprep.subr.bf16.mxu0 %v1462_v11 }
  0x54   : > { %988 = vperm.xlu1 %1413, %v1651_v36   ;;  %v876_v36 = vrot.slane %v850_v31, %v1739_v27 }
  0x56   : > { %795 = vmatpush1.bf16.msra.mxu0 %v1460_v12 }
  0x57   : > { %796 = vmatprep.subr.bf16.mxu0 %v1465_v13  ;;  %v994_v13 = vrot.slane %v849_v29, %v567_v60 }
  0x5a   : > { %797 = vmatpush1.bf16.msra.mxu0 %v1463_v14  ;;  %v998_v14 = vrot.slane %v850_v31, %v567_v60 }
  0x5b   : > { %798 = vmatprep.subr.bf16.mxu0 %v1468_v15 }
  0x5e   : > { %799 = vmatpush1.bf16.msra.mxu0 %v1466_v16  ;;  %v564_v16 = vrot.slane %v1760_v6, %v1739_v27 }
  0x61   : > { %1361 = vmatmul.mubr.msk.bf16.vlgmr.msra.gmra.mrb[4].mxu0 %vm515_vm0, %v441_v4 }
  0xac   : > { %v867_v17 = vpop.permute.xlu1 %866  ;;  %v857_v20 = vpop.permute.xlu0 %856 }
  0xad   : > { %v877_v42 = vmul.f32 %v872_v33, %v857_v20  ;;  %v881_v45 = vmul.f32 %v872_v33, %v867_v17  ;;  %v878_v48 = vmul.f32 %v876_v36, %v857_v20  ;;  %v882_v52 = vmul.f32 %v876_v36, %v867_v17 }
  0xae   : > { %v698_v17 = vrot.slane %v1760_v6, %v1742_v28 }
  0xb2   : > { %v885_v18 = vpop.permute.xlu1 %884 }
  0xb3   : > { %v862_v23 = vpop.permute.xlu0 %861  ;;  %v903_v40 = vmul.f32 %v898_v34, %v885_v18  ;;  %v904_v46 = vmul.f32 %v902_v37, %v885_v18  ;;  %v568_v18 = vrot.slane %v1760_v6, %v567_v60 }
  0xb4   : > { %v879_v38 = vmul.f32 %v872_v33, %v862_v23  ;;  %v880_v50 = vmul.f32 %v876_v36, %v862_v23 }
  0xb5   : > { %v909_v58 = vadd.f32 %v903_v40, %v877_v42  ;;  %v910_v62 = vadd.f32 %v904_v46, %v878_v48  ;;  %v578_v42 = vrot.slane %v568_v18, %v1739_v27 }
  0xb7   : > { %v893_v19 = vpop.permute.xlu1 %892 }
  0xb8   : > { %v889_v26 = vpop.permute.xlu0 %888  ;;  %v907_v47 = vmul.f32 %v898_v34, %v893_v19  ;;  %v908_v53 = vmul.f32 %v902_v37, %v893_v19  ;;  %v702_v19 = vrot.slane %v1760_v6, %v701_v0 }
  0xb9   : > { %v905_v39 = vmul.f32 %v898_v34, %v889_v26  ;;  %v906_v51 = vmul.f32 %v902_v37, %v889_v26 }
  0xba   : > { %v913_v61 = vadd.f32 %v907_v47, %v881_v45  ;;  %v914_v7 = vadd.f32 %v908_v53, %v882_v52 }
  0xbb   : > { %v911_v54 = vadd.f32 %v905_v39, %v879_v38  ;;  %v912_v3 = vadd.f32 %v906_v51, %v880_v50  ;;  %v574_v38 = vrot.slane %v564_v16, %v1739_v27  ;;  %v708_v39 = vrot.slane %v698_v17, %v1742_v28 }
  0xbc   : > { %v917_v21 = vpop.permute.xlu1 %916 }
  0xbd   : > { %v935_v57 = vmul.f32 %v930_v41, %v917_v21  ;;  %v936_v1 = vmul.f32 %v934_v49, %v917_v21 }
  0xbf   : > { %v921_v35 = vpop.permute.xlu0 %920  ;;  %v941_v11 = vadd.f32 %v935_v57, %v909_v58  ;;  %v942_v21 = vadd.f32 %v936_v1, %v910_v62 }
  0xc0   : > { %v925_v24 = vpop.permute.xlu1 %924  ;;  %v937_v55 = vmul.f32 %v930_v41, %v921_v35  ;;  %v938_v5 = vmul.f32 %v934_v49, %v921_v35 }
  0xc1   : > { %v939_v2 = vmul.f32 %v930_v41, %v925_v24  ;;  %v940_v8 = vmul.f32 %v934_v49, %v925_v24 }
  0xc2   : > { %v943_v9 = vadd.f32 %v937_v55, %v911_v54  ;;  %v944_v23 = vadd.f32 %v938_v5, %v912_v3 }
  0xc3   : > { %v945_v20 = vadd.f32 %v939_v2, %v913_v61  ;;  %v946_v24 = vadd.f32 %v940_v8, %v914_v7 }
  0xc4   : > { %v953_v56 = vpop.permute.xlu0 %952 }
  0xc5   : > { %v969_v10 = vmul.f32 %v962_v59, %v953_v56  ;;  %v970_v33 = vmul.f32 %v966_v63, %v953_v56 }
  0xc6   : > { %v949_v30 = vpop.permute.xlu1 %948 }
  0xc7   : > { %v967_v12 = vmul.f32 %v962_v59, %v949_v30  ;;  %v968_v22 = vmul.f32 %v966_v63, %v949_v30  ;;  %v975_v29 = vadd.f32 %v969_v10, %v943_v9  ;;  %v712_v30 = vrot.slane %v702_v19, %v1742_v28 }
  0xc8   : > { %v976_v46 = vadd.f32 %v970_v33, %v944_v23 }
  0xc9   : > { %v973_v31 = vadd.f32 %v967_v12, %v941_v11  ;;  %v974_v40 = vadd.f32 %v968_v22, %v942_v21 }
  0xca   : > { %v957_v44 = vpop.permute.xlu1 %956 }
  0xcb   : > { %v971_v26 = vmul.f32 %v962_v59, %v957_v44  ;;  %v972_v34 = vmul.f32 %v966_v63, %v957_v44 }
  0xcc   : > { %v985_v15 = vpop.permute.xlu0 %984 }
  0xcd   : > { %v1001_v37 = vmul.f32 %v994_v13, %v985_v15  ;;  %v977_v43 = vadd.f32 %v971_v26, %v945_v20  ;;  %v1002_v47 = vmul.f32 %v998_v14, %v985_v15  ;;  %v978_v48 = vadd.f32 %v972_v34, %v946_v24 }
  0xce   : > { %v832_v34 = vrot.slane %v1760_v6, %v1745_v32 }
  0xcf   : > { %v981_v4 = vpop.permute.xlu1 %980  ;;  %v1774_v50 = vadd.f32 %v1001_v37, %v975_v29  ;;  %v1780_v61 = vadd.f32 %v1002_v47, %v976_v46 }
  0xd0   : > { %v999_v35 = vmul.f32 %v994_v13, %v981_v4  ;;  %v1000_v41 = vmul.f32 %v998_v14, %v981_v4 }
  0xd1   : > { %v1089_v46 = vrot.slane %v1774_v50, 6 }
  0xd2   : > { %v1772_v49 = vadd.f32 %v999_v35, %v973_v31  ;;  %v1776_v57 = vadd.f32 %v1000_v41, %v974_v40  ;;  %v835_v31 = vsub.s32 6, %v1733_v25 }
  0xd3   : > { %v989_v36 = vpop.permute.xlu1 %988 }
  0xd4   : > { %v1003_v45 = vmul.f32 %v994_v13, %v989_v36  ;;  %v1004_v44 = vmul.f32 %v998_v14, %v989_v36  ;;  %v836_v35 = vrot.slane %v1760_v6, %v835_v31  ;;  %v842_v36 = vrot.slane %v832_v34, %v1745_v32 }
  0xd6   : > { %v1778_v60 = vadd.f32 %v1003_v45, %v977_v43  ;;  %v1782_v1 = vadd.f32 %v1004_v44, %v978_v48  ;;  %v846_v37 = vrot.slane %v836_v35, %v1745_v32  ;;  %v1090_v48 = vrot.slane %v1780_v61, 6 }
 0x11c   : > { %v553_v51 = vpop.f32.mrb[0].mxu0  ;;  %v688_v52 = vpop.f32.mrb[0].mxu1 }
 0x11d   : > { %v579_v53 = vadd.f32 %v574_v38, %v553_v51  ;;  %v713_v54 = vadd.f32 %v708_v39, %v688_v52  ;;  %v555_v55 = vpop.f32.mrb[1].mxu0  ;;  %v690_v56 = vpop.f32.mrb[1].mxu1  ;;  %v1047_v52 = vrot.slane %v1772_v49, 6 }
 0x11e   : > { %v580_v27 = vadd.f32 %v578_v42, %v555_v55  ;;  %v714_v28 = vadd.f32 %v712_v30, %v690_v56  ;;  %v557_v58 = vpop.f32.mrb[2].mxu0  ;;  %v692_v59 = vpop.f32.mrb[2].mxu1  ;;  %v1048_v56 = vrot.slane %v1776_v57, 6 }
 0x11f   : > { %v1015_v62 = vrot.slane %v713_v54, 6  ;;  %v558_v63 = vpop.f32.mrb[3].mxu0  ;;  %v693_v0 = vpop.f32.mrb[3].mxu1  ;;  %v1011_v2 = vmul.f32 %v1772_v49, %v579_v53  ;;  %v1065_v3 = vmul.f32 %v1774_v50, %v579_v53  ;;  %v1108_v5 = vmul.f32 %v1778_v60, %v579_v53 }
 0x120   : > { %v1016_v4 = vrot.slane %v714_v28, 6  ;;  %v1012_v10 = vmul.f32 %v1776_v57, %v580_v27  ;;  %v1066_v17 = vmul.f32 %v1780_v61, %v580_v27  ;;  %v1109_v18 = vmul.f32 %v1782_v1, %v580_v27 }
 0x121   : > { %v1019_v7 = vmul.f32 %v1015_v62, %v1772_v49  ;;  %v1067_v8 = vmul.f32 %v1015_v62, %v1774_v50  ;;  %v1110_v9 = vmul.f32 %v1015_v62, %v1778_v60  ;;  %v1132_v58 = vrot.slane %v1778_v60, 6 }
 0x122   : > { %v1020_v11 = vmul.f32 %v1016_v4, %v1776_v57  ;;  %v1068_v12 = vmul.f32 %v1016_v4, %v1780_v61  ;;  %v1111_v13 = vmul.f32 %v1016_v4, %v1782_v1 }
 0x123   : > { %v1023_v14 = vrot.slane %v1019_v7, 2  ;;  %v1071_v15 = vrot.slane %v1067_v8, 2  ;;  %v1114_v16 = vrot.slane %v1110_v9, 2 }
 0x124   : > { %v1024_v19 = vrot.slane %v1020_v11, 2  ;;  %v1072_v20 = vrot.slane %v1068_v12, 2  ;;  %v1115_v21 = vrot.slane %v1111_v13, 2 }
 0x125   : > { %v1027_v22 = vadd.f32 %v1023_v14, %v1011_v2  ;;  %v1075_v23 = vadd.f32 %v1071_v15, %v1065_v3  ;;  %v1118_v24 = vadd.f32 %v1114_v16, %v1108_v5 }
 0x126   : > { %v1028_v26 = vadd.f32 %v1024_v19, %v1012_v10  ;;  %v1076_v33 = vadd.f32 %v1072_v20, %v1066_v17  ;;  %v1119_v29 = vadd.f32 %v1115_v21, %v1109_v18 }
 0x134   : > { %v822_v38 = vpop.f32.mrb[4].mxu0 }
 0x135   : > { %v847_v39 = vadd.f32 %v842_v36, %v822_v38  ;;  %v824_v40 = vpop.f32.mrb[5].mxu0 }
 0x136   : > { %v848_v41 = vadd.f32 %v846_v37, %v824_v40  ;;  %v826_v42 = vpop.f32.mrb[6].mxu0 }
 0x137   : > { %v1031_v30 = vrot.slane %v847_v39, 4  ;;  %v827_v43 = vpop.f32.mrb[7].mxu0 }
 0x138   : > { %v1032_v45 = vrot.slane %v848_v41, 4 }
 0x139   : > { %v1035_v25 = vmul.f32 %v1031_v30, %v1772_v49  ;;  %v1077_v47 = vmul.f32 %v1031_v30, %v1774_v50  ;;  %v1120_v6 = vmul.f32 %v1031_v30, %v1778_v60 }
 0x13a   : > { %v1036_v32 = vmul.f32 %v1032_v45, %v1776_v57  ;;  %v1078_v44 = vmul.f32 %v1032_v45, %v1780_v61  ;;  %v1121_v51 = vmul.f32 %v1032_v45, %v1782_v1  ;;  %v1133_v61 = vrot.slane %v1782_v1, 6 }
 0x13b   : > { %v1039_v53 = vrot.slane %v1035_v25, 4  ;;  %v1081_v54 = vrot.slane %v1077_v47, 4  ;;  %v1124_v55 = vrot.slane %v1120_v6, 4 }
 0x13c   : > { %v1040_v27 = vrot.slane %v1036_v32, 4  ;;  %v1082_v50 = vrot.slane %v1078_v44, 4  ;;  %v1125_v28 = vrot.slane %v1121_v51, 4 }
 0x13d   : > { %v1043_v59 = vadd.f32 %v1039_v53, %v1027_v22  ;;  %v1085_v62 = vadd.f32 %v1081_v54, %v1075_v23  ;;  %v1128_v63 = vadd.f32 %v1124_v55, %v1118_v24 }
 0x13e   : > { %v1044_v0 = vadd.f32 %v1040_v27, %v1028_v26  ;;  %v1086_v2 = vadd.f32 %v1082_v50, %v1076_v33  ;;  %v1129_v49 = vadd.f32 %v1125_v28, %v1119_v29 }
 0x13f   : > { %v1051_v3 = vadd.f32 %v1047_v52, %v1043_v59  ;;  %v1093_v4 = vadd.f32 %v1089_v46, %v1085_v62  ;;  %v1136_v5 = vadd.f32 %v1132_v58, %v1128_v63 }
 0x140   : > { %v1052_v7 = vadd.f32 %v1048_v56, %v1044_v0  ;;  %v1094_v57 = vadd.f32 %v1090_v48, %v1086_v2  ;;  %v1137_v8 = vadd.f32 %v1133_v61, %v1129_v49  ;;  %1157 = sbr.rel (!%p1559_p5) target bundleno = 335 (0x14f), region = 82 }
 0x142   : > { %v1055_v9 = vcombine.low %v1051_v3, %v1052_v7  ;;  %v1097_v10 = vcombine.low %v1093_v4, %v1094_v57  ;;  %v1140_v11 = vcombine.low %v1136_v5, %v1137_v8 }
 0x144   : > { %1362 = vst.sshfl [vmem:[%s425_s12] sm:$0x33 pattern:$0x76325410] %v1055_v9 }
 0x145   : > { %1370 = vst.sshfl [vmem:[%s425_s12 + $0x4] sm:$0x33 pattern:$0x76325410] %v1097_v10 }
 0x146   : > { %1371 = vst.sshfl [vmem:[%s425_s12 + $0x8] sm:$0x33 pattern:$0x76325410] %v1140_v11 }
 0x14b   : > { %v1176_v60 = vld [vmem:[%s425_s12] sm:$0xf] }
 0x14c   : > { %v1178_v1 = vld [vmem:[%s425_s12 + $0x4] sm:$0xf]  ;;  %1177 = vst [vmem:[%s1160_s14] sm:$0xf] %v1176_v60 }
 0x14d   : > { %v1180_v12 = vld [vmem:[%s425_s12 + $0x8] sm:$0xf]  ;;  %1179 = vst [vmem:[%s1160_s14 + $0x8] sm:$0xf] %v1178_v1 }
 0x14e   : > { %1181 = vst [vmem:[%s1160_s14 + $0x10] sm:$0xf] %v1180_v12 }
 0x14f PF: > { %p12_p11 = scmp.ge.s32.totalorder %s1547_s22, 4   ;;  %s1839_s18 = smov %s1487_s19 }
 0x150   : > { %s1840_s19 = smov %s1557_s25  ;;  %s1841_s20 = smov %s1547_s22 }
 0x151   :  { %14 = sbr.rel (!%p12_p11) target bundleno = 2 (0x2), region = 164 }

</bundles_post_ra>
